<compile_context>
chip_gen: v7x
topology: tpu7x:2x2x1
jax: 0.10.0
libtpu: 0.0.40
codegen_flags: <defaults>
</compile_context>

<pallas_src>
import functools

import jax
import jax.numpy as jnp
from jax.experimental import pallas as pl
from jax.experimental.pallas import tpu as pltpu

IN_FEATURES = 20
HID1 = 64
HID2 = 32
OUT_FEATURES = 16

_LANE = 128              # batch (lane) tiles must be a multiple of this
_PREFERRED_TILE = 2048   # sweep 1024/2048/4096; 2048 keeps VMEM tiny everywhere
_SINGLE_TILE_MAX = 512   # below this the call sits on the fixed-overhead floor


def nest_mlp_kernel(xt_ref, w1_ref, b1_ref, w2_ref, b2_ref, w3_ref, b3_ref, ot_ref):
    """One batch tile, batch-in-lanes: activations are (features, tb)."""
    xt = xt_ref[...]                                                    # (20, tb)

    # net[0]: Linear(20, 64) + ReLU                                    -> (64, tb)
    h = jnp.dot(w1_ref[...], xt, preferred_element_type=jnp.float32) + b1_ref[...]
    h = jnp.maximum(h, 0.0)

    # net[2]: Linear(64, 32) + ReLU                                    -> (32, tb)
    h = jnp.dot(w2_ref[...], h, preferred_element_type=jnp.float32) + b2_ref[...]
    h = jnp.maximum(h, 0.0)

    # self.linear: Linear(32, 16)                                      -> (16, tb)
    out = jnp.dot(w3_ref[...], h, preferred_element_type=jnp.float32) + b3_ref[...]
    ot_ref[...] = out.astype(ot_ref.dtype)                             # lane-dense store


def _choose_tile(batch, tb):
    """Pick the batch (lane) tile size."""
    if tb is not None:
        tb = int(tb)
        if tb >= batch:
            return batch
        # Sanitize: lane tile must be a multiple of 128 (or cover the batch).
        return max(_LANE, (tb // _LANE) * _LANE)
    if batch <= _SINGLE_TILE_MAX:
        return batch                          # single grid step; overhead floor
    # >= 2 grid steps so the "parallel" axis can shard over v7x's 2 TCs,
    # capped at the preferred tile to keep per-step work large.
    half = -(-batch // 2)                     # cdiv(batch, 2)
    half_aligned = -(-half // _LANE) * _LANE  # round up to lane granule
    return min(_PREFERRED_TILE, half_aligned)


@functools.partial(jax.jit, static_argnames=("tb",))
def nest_mlp(x, params, *, tb=None):
    """x: (B, 20) f32. Returns (B, 16) f32, same as NestMLP.forward."""
    w1, b1, w2, b2, w3, b3 = params
    batch = x.shape[0]
    tb = _choose_tile(batch, tb)
    grid = (pl.cdiv(batch, tb),)

    # One cheap layout flip so batch sits on the 128-lane axis inside the
    # kernel (lane-dense loads/stores); flipped back once on the way out.
    x_t = jnp.transpose(x)                                              # (20, B)

    # Grid-invariant operands: fetched once, single-buffered.
    def wspec(shape):
        return pl.BlockSpec(shape, lambda i: (0, 0), pipeline_mode=pl.Buffered(1))

    out_t = pl.pallas_call(
        nest_mlp_kernel,
        out_shape=jax.ShapeDtypeStruct((OUT_FEATURES, batch), jnp.float32),
        grid=grid,
        in_specs=[
            pl.BlockSpec((IN_FEATURES, tb), lambda i: (0, i)),          # x.T tile
            wspec((HID1, IN_FEATURES)),                                 # W1 (64, 20)
            wspec((HID1, 1)),                                           # b1 (64, 1)
            wspec((HID2, HID1)),                                        # W2 (32, 64)
            wspec((HID2, 1)),                                           # b2 (32, 1)
            wspec((OUT_FEATURES, HID2)),                                # W3 (16, 32)
            wspec((OUT_FEATURES, 1)),                                   # b3 (16, 1)
        ],
        out_specs=pl.BlockSpec((OUT_FEATURES, tb), lambda i: (0, i)),
        compiler_params=pltpu.CompilerParams(
            dimension_semantics=("parallel",),
        ),
    )(x_t, w1, b1, w2, b2, w3, b3)

    return jnp.transpose(out_t)                                         # (B, 16)


def init_params(key):
    """Deterministic synthetic nn.Linear parameters (PyTorch default init),
    kept in the native torch (out, in) layout; biases stored as (out, 1)
    columns so they broadcast over the lane (batch) axis inside the kernel."""

    def linear_params(k, fan_in, fan_out):
        kw, kb = jax.random.split(k)
        bound = 1.0 / (fan_in ** 0.5)
        w = jax.random.uniform(kw, (fan_out, fan_in), jnp.float32,
                               minval=-bound, maxval=bound)              # torch layout
        b = jax.random.uniform(kb, (fan_out,), jnp.float32,
                               minval=-bound, maxval=bound)
        return w, b.reshape(fan_out, 1)

    k1, k2, k3 = jax.random.split(key, 3)
    w1, b1 = linear_params(k1, IN_FEATURES, HID1)
    w2, b2 = linear_params(k2, HID1, HID2)
    w3, b3 = linear_params(k3, HID2, OUT_FEATURES)
    return w1, b1, w2, b2, w3, b3


def reference(x, params):
    """Pure-JAX reference of NestMLP.forward."""
    w1, b1, w2, b2, w3, b3 = params
    h = jnp.maximum(x @ w1.T + b1[:, 0], 0.0)
    h = jnp.maximum(h @ w2.T + b2[:, 0], 0.0)
    return h @ w3.T + b3[:, 0]


if __name__ == "__main__":
    key = jax.random.PRNGKey(0)
    k_params, k_x1, k_x2 = jax.random.split(key, 3)
    params = init_params(k_params)

    # Small-batch case (single grid step); feature widths fixed by the module.
    x_small = jax.random.normal(k_x1, (8, IN_FEATURES), jnp.float32)
    out_small = jax.block_until_ready(nest_mlp(x_small, params))
    ref_small = jax.block_until_ready(reference(x_small, params))
    assert out_small.shape == (8, OUT_FEATURES), out_small.shape
    assert jnp.allclose(out_small, ref_small, rtol=1e-5, atol=1e-5)

    # Tiled case: batch=640 -> tile=384, grid=(2,), second block partially
    # masked -- exercises the multi-step / partial-trailing-tile path.
    x_big = jax.random.normal(k_x2, (640, IN_FEATURES), jnp.float32)
    out_big = jax.block_until_ready(nest_mlp(x_big, params))
    ref_big = jax.block_until_ready(reference(x_big, params))
    assert out_big.shape == (640, OUT_FEATURES), out_big.shape
    assert jnp.allclose(out_big, ref_big, rtol=1e-5, atol=1e-5)

    print("KERNEL_OK")
</pallas_src>

<mosaic_0001>
module attributes {stable_mosaic.version = 11 : i64} {
  func.func @nest_mlp_kernel(%arg0: i32, %arg1: memref<20x8xf32, #tpu.memory_space<vmem>>, %arg2: memref<64x20xf32, #tpu.memory_space<vmem>>, %arg3: memref<64x1xf32, #tpu.memory_space<vmem>>, %arg4: memref<32x64xf32, #tpu.memory_space<vmem>>, %arg5: memref<32x1xf32, #tpu.memory_space<vmem>>, %arg6: memref<16x32xf32, #tpu.memory_space<vmem>>, %arg7: memref<16x1xf32, #tpu.memory_space<vmem>>, %arg8: memref<16x8xf32, #tpu.memory_space<vmem>>) attributes {dimension_semantics = [#tpu.dimension_semantics<parallel>], iteration_bounds = array<i64: 1>, scalar_prefetch = 0 : i64, scratch_operands = 0 : i64, tpu.core_type = #tpu.core_type<tc>, window_params = [{transform_indices = @transform_0, window_bounds = array<i64: 20, 8>}, {pipeline_mode = #tpu.pipeline_mode<synchronous>, transform_indices = @transform_1, window_bounds = array<i64: 64, 20>}, {pipeline_mode = #tpu.pipeline_mode<synchronous>, transform_indices = @transform_2, window_bounds = array<i64: 64, 1>}, {pipeline_mode = #tpu.pipeline_mode<synchronous>, transform_indices = @transform_3, window_bounds = array<i64: 32, 64>}, {pipeline_mode = #tpu.pipeline_mode<synchronous>, transform_indices = @transform_4, window_bounds = array<i64: 32, 1>}, {pipeline_mode = #tpu.pipeline_mode<synchronous>, transform_indices = @transform_5, window_bounds = array<i64: 16, 32>}, {pipeline_mode = #tpu.pipeline_mode<synchronous>, transform_indices = @transform_6, window_bounds = array<i64: 16, 1>}, {transform_indices = @transform_7, window_bounds = array<i64: 16, 8>}]} {
    %c0 = arith.constant 0 : index
    %c0_0 = arith.constant 0 : index
    %0 = vector.load %arg1[%c0, %c0_0] : memref<20x8xf32, #tpu.memory_space<vmem>>, vector<20x8xf32>
    %c0_1 = arith.constant 0 : index
    %c0_2 = arith.constant 0 : index
    %1 = vector.load %arg2[%c0_1, %c0_2] : memref<64x20xf32, #tpu.memory_space<vmem>>, vector<64x20xf32>
    %cst = arith.constant dense<0.000000e+00> : vector<64x8xf32>
    %2 = tpu.matmul %1, %0, %cst {dimension_numbers = #tpu.dot_dimension_numbers<[1], [0], [0], [1], [0, 0, 1, 1], [], []>} : vector<64x20xf32>, vector<20x8xf32>, vector<64x8xf32> -> vector<64x8xf32>
    %c0_3 = arith.constant 0 : index
    %c0_4 = arith.constant 0 : index
    %3 = vector.load %arg3[%c0_3, %c0_4] : memref<64x1xf32, #tpu.memory_space<vmem>>, vector<64x1xf32>
    %4 = vector.broadcast %3 : vector<64x1xf32> to vector<64x8xf32>
    %5 = arith.addf %2, %4 : vector<64x8xf32>
    %cst_5 = arith.constant 0.000000e+00 : f32
    %6 = vector.broadcast %cst_5 : f32 to vector<64x8xf32>
    %7 = arith.maximumf %5, %6 : vector<64x8xf32>
    %c0_6 = arith.constant 0 : index
    %c0_7 = arith.constant 0 : index
    %8 = vector.load %arg4[%c0_6, %c0_7] : memref<32x64xf32, #tpu.memory_space<vmem>>, vector<32x64xf32>
    %cst_8 = arith.constant dense<0.000000e+00> : vector<32x8xf32>
    %9 = tpu.matmul %8, %7, %cst_8 {dimension_numbers = #tpu.dot_dimension_numbers<[1], [0], [0], [1], [0, 0, 1, 1], [], []>} : vector<32x64xf32>, vector<64x8xf32>, vector<32x8xf32> -> vector<32x8xf32>
    %c0_9 = arith.constant 0 : index
    %c0_10 = arith.constant 0 : index
    %10 = vector.load %arg5[%c0_9, %c0_10] : memref<32x1xf32, #tpu.memory_space<vmem>>, vector<32x1xf32>
    %11 = vector.broadcast %10 : vector<32x1xf32> to vector<32x8xf32>
    %12 = arith.addf %9, %11 : vector<32x8xf32>
    %cst_11 = arith.constant 0.000000e+00 : f32
    %13 = vector.broadcast %cst_11 : f32 to vector<32x8xf32>
    %14 = arith.maximumf %12, %13 : vector<32x8xf32>
    %c0_12 = arith.constant 0 : index
    %c0_13 = arith.constant 0 : index
    %15 = vector.load %arg6[%c0_12, %c0_13] : memref<16x32xf32, #tpu.memory_space<vmem>>, vector<16x32xf32>
    %cst_14 = arith.constant dense<0.000000e+00> : vector<16x8xf32>
    %16 = tpu.matmul %15, %14, %cst_14 {dimension_numbers = #tpu.dot_dimension_numbers<[1], [0], [0], [1], [0, 0, 1, 1], [], []>} : vector<16x32xf32>, vector<32x8xf32>, vector<16x8xf32> -> vector<16x8xf32>
    %c0_15 = arith.constant 0 : index
    %c0_16 = arith.constant 0 : index
    %17 = vector.load %arg7[%c0_15, %c0_16] : memref<16x1xf32, #tpu.memory_space<vmem>>, vector<16x1xf32>
    %18 = vector.broadcast %17 : vector<16x1xf32> to vector<16x8xf32>
    %19 = arith.addf %16, %18 : vector<16x8xf32>
    %c0_17 = arith.constant 0 : index
    %c0_18 = arith.constant 0 : index
    %20 = vector.load %arg8[%c0_17, %c0_18] : memref<16x8xf32, #tpu.memory_space<vmem>>, vector<16x8xf32>
    tpu.vector_store %arg8[%c0_17, %c0_18], %19 {strides = array<i32>} : memref<16x8xf32, #tpu.memory_space<vmem>>, vector<16x8xf32>,
    return
  }
  func.func @transform_0(%arg0: i32) -> (i32, i32) {
    %c0_i32 = arith.constant 0 : i32
    %c0_i32_0 = arith.constant 0 : i32
    return %c0_i32, %arg0 : i32, i32
  }
  func.func @transform_1(%arg0: i32) -> (i32, i32) {
    %c0_i32 = arith.constant 0 : i32
    %c0_i32_0 = arith.constant 0 : i32
    %c0_i32_1 = arith.constant 0 : i32
    return %c0_i32, %c0_i32_0 : i32, i32
  }
  func.func @transform_2(%arg0: i32) -> (i32, i32) {
    %c0_i32 = arith.constant 0 : i32
    %c0_i32_0 = arith.constant 0 : i32
    %c0_i32_1 = arith.constant 0 : i32
    return %c0_i32, %c0_i32_0 : i32, i32
  }
  func.func @transform_3(%arg0: i32) -> (i32, i32) {
    %c0_i32 = arith.constant 0 : i32
    %c0_i32_0 = arith.constant 0 : i32
    %c0_i32_1 = arith.constant 0 : i32
    return %c0_i32, %c0_i32_0 : i32, i32
  }
  func.func @transform_4(%arg0: i32) -> (i32, i32) {
    %c0_i32 = arith.constant 0 : i32
    %c0_i32_0 = arith.constant 0 : i32
    %c0_i32_1 = arith.constant 0 : i32
    return %c0_i32, %c0_i32_0 : i32, i32
  }
  func.func @transform_5(%arg0: i32) -> (i32, i32) {
    %c0_i32 = arith.constant 0 : i32
    %c0_i32_0 = arith.constant 0 : i32
    %c0_i32_1 = arith.constant 0 : i32
    return %c0_i32, %c0_i32_0 : i32, i32
  }
  func.func @transform_6(%arg0: i32) -> (i32, i32) {
    %c0_i32 = arith.constant 0 : i32
    %c0_i32_0 = arith.constant 0 : i32
    %c0_i32_1 = arith.constant 0 : i32
    return %c0_i32, %c0_i32_0 : i32, i32
  }
  func.func @transform_7(%arg0: i32) -> (i32, i32) {
    %c0_i32 = arith.constant 0 : i32
    %c0_i32_0 = arith.constant 0 : i32
    return %c0_i32, %arg0 : i32, i32
  }
}

</mosaic_0001>

<bundles_post_ra>
// kernel: nest_mlp.1
= control target key start
LH: loop header
LB: loop body
LE: loop exit
PB: predicated region body
PF: predicated region fallthrough
CT: control target
= control target key end

     0   :  { %vm85_vm0 = vcmask 162816   ;;  %v586_v2 = vmov 0   ;;  %vm110_vm1 = vcmask 1043456   ;;  %vm255_vm2 = vcmask 523264   ;;  %s740_s0 = inlined_call_operand.vmem [shape: f32[20,8], index: 0, kind: input, shape index: {}]   ;;  %s741_s1 = inlined_call_operand.vmem [shape: f32[64,20], index: 1, kind: input, shape index: {}]   ;;  %s742_s2 = inlined_call_operand.vmem [shape: f32[64,1], index: 2, kind: input, shape index: {}]   ;;  %s743_s4 = inlined_call_operand.vmem [shape: f32[32,1], index: 4, kind: input, shape index: {}]   ;;  %s744_s6 = inlined_call_operand.vmem [shape: f32[16,1], index: 6, kind: input, shape index: {}]   ;;  %s745_s3 = inlined_call_operand.vmem [shape: f32[32,64], index: 3, kind: input, shape index: {}]   ;;  %s746_s5 = inlined_call_operand.vmem [shape: f32[16,32], index: 5, kind: input, shape index: {}]   ;;  %s747_s7 = inlined_call_operand.vmem [shape: f32[16,8], index: 7, kind: output, shape index: {}]  }
   0x1   :  { %v26_v0 = vld [vmem:[%s740_s0] sm:$0xff]  ;;  %v27_v1 = vld [vmem:[%s740_s0 + $0x8] sm:$0xff]  ;;  %584 = vset.pattern.permute.xlu0 %v586_v2  ;;  %585 = vset.pattern.permute.xlu1 %v586_v2  ;;  %v28_v5 = vld [vmem:[%s740_s0 + $0x10] sm:$0xf]  ;;  %vm371_vm3 = vcmask 261120   ;;  %vm453_vm4 = vcmask 64512  }
   0x2   :  { %v555_v3 = vpack.c.bf16 %v27_v1, %v26_v0  ;;  %v29_v4 = vld [vmem:[%s741_s1] sm:$0xff]  ;;  %v39_v7 = vld [vmem:[%s742_s2 + $0x10] sm:$0xff]  ;;  %v38_v8 = vld [vmem:[%s742_s2 + $0x8] sm:$0xff] }
   0x3   :  { %510 = vmatprep.mubr.msk.f32.mxu0 %vm85_vm0, %v29_v4  ;;  %v37_v6 = vld [vmem:[%s742_s2] sm:$0xff]  ;;  %57 = vperm.xlu1 %585, %v39_v7   ;;  %v30_v9 = vld [vmem:[%s741_s1 + $0x8] sm:$0xff]  ;;  %v40_v10 = vld [vmem:[%s742_s2 + $0x18] sm:$0xff] }
   0x4   :  { %556 = vmatprep.subr.bf16.mxu0 %v555_v3  ;;  %47 = vperm.xlu0 %584, %v37_v6   ;;  %v31_v11 = vld [vmem:[%s741_s1 + $0x10] sm:$0xff]  ;;  %v41_v12 = vld [vmem:[%s742_s2 + $0x20] sm:$0xff]  ;;  %v32_v13 = vld [vmem:[%s741_s1 + $0x18] sm:$0xff] }
   0x5   :  { %558 = vmatpush3.bf16.msra.mxu0 %v555_v3  ;;  %v42_v14 = vld [vmem:[%s742_s2 + $0x28] sm:$0xff]  ;;  %v33_v15 = vld [vmem:[%s741_s1 + $0x20] sm:$0xff]  ;;  %v43_v16 = vld [vmem:[%s742_s2 + $0x30] sm:$0xff] }
   0x6   :  { %508 = vmatprep.subr.msk.mxu0 %vm110_vm1, %v28_v5  ;;  %v34_v17 = vld [vmem:[%s741_s1 + $0x28] sm:$0xff]  ;;  %v44_v18 = vld [vmem:[%s742_s2 + $0x38] sm:$0xff]  ;;  %v35_v19 = vld [vmem:[%s741_s1 + $0x30] sm:$0xff] }
   0x7   :  { %62 = vperm.xlu1 %585, %v40_v10   ;;  %v231_v20 = vld [vmem:[%s743_s4] sm:$0xff]  ;;  %v36_v21 = vld [vmem:[%s741_s1 + $0x38] sm:$0xff]  ;;  %v232_v22 = vld [vmem:[%s743_s4 + $0x8] sm:$0xff] }
   0x8   :  { %52 = vperm.xlu0 %584, %v38_v8   ;;  %v233_v23 = vld [vmem:[%s743_s4 + $0x10] sm:$0xff]  ;;  %v234_v24 = vld [vmem:[%s743_s4 + $0x18] sm:$0xff]  ;;  %v359_v25 = vld [vmem:[%s744_s6] sm:$0xff] }
   0x9   :  { %509 = vmatpush3.msk.msra.mxu0 %vm110_vm1, %v28_v5  ;;  %v360_v26 = vld [vmem:[%s744_s6 + $0x8] sm:$0xff]  ;;  %v227_v27 = vld [vmem:[%s745_s3] sm:$0xff]  ;;  %v229_v1 = vld [vmem:[%s745_s3 + $0x10] sm:$0xff] }
   0xa   :  { %511 = vmatmul.mubr.msk.f32.vlgmr.msra.gmra.mrb[0].mxu0 %vm85_vm0, %v30_v9  ;;  %538 = vmatprep.mubr.msk.f32.mxu1 %vm255_vm2, %v227_v27  ;;  %v228_v0 = vld [vmem:[%s745_s3 + $0x8] sm:$0xff]  ;;  %v230_v2 = vld [vmem:[%s745_s3 + $0x18] sm:$0xff]  ;;  %v357_v3 = vld [vmem:[%s746_s5] sm:$0xff] }
   0xb   :  { %513 = vmatprep.mubr.msk.f32.mxu0 %vm85_vm0, %v31_v11  ;;  %72 = vperm.xlu1 %585, %v42_v14  }
   0xc   :  { %67 = vperm.xlu0 %584, %v41_v12  }
   0xe   :  { %514 = vmatmul.mubr.msk.f32.gmra.mrb[2].mxu0 %vm85_vm0, %v32_v13 }
   0xf   :  { %516 = vmatprep.mubr.msk.f32.mxu0 %vm85_vm0, %v33_v15  ;;  %82 = vperm.xlu1 %585, %v44_v18  }
  0x10   :  { %77 = vperm.xlu0 %584, %v43_v16  }
  0x12   :  { %517 = vmatmul.mubr.msk.f32.gmra.mrb[4].mxu0 %vm85_vm0, %v34_v17 }
  0x13   :  { %519 = vmatprep.mubr.msk.f32.mxu0 %vm85_vm0, %v35_v19  ;;  %242 = vperm.xlu1 %585, %v232_v22   ;;  %v358_v22 = vld [vmem:[%s746_s5 + $0x8] sm:$0xff] }
  0x14   :  { %237 = vperm.xlu0 %584, %v231_v20  }
  0x16   :  { %520 = vmatmul.mubr.msk.f32.gmra.mrb[6].mxu0 %vm85_vm0, %v36_v21 }
  0x17   :  { %252 = vperm.xlu1 %585, %v234_v24   ;;  %552 = vmatprep.mubr.msk.f32.mxu0 %vm371_vm3, %v357_v3 }
  0x18   :  { %247 = vperm.xlu0 %584, %v233_v23  }
  0x1b   :  { %368 = vperm.xlu1 %585, %v360_v26  }
  0x1c   :  { %363 = vperm.xlu0 %584, %v359_v25  }
  0x82   :  { %v58_v29 = vpop.permute.xlu1 %57 }
  0x83   :  { %v48_v28 = vpop.permute.xlu0 %47 }
  0x86   :  { %v63_v31 = vpop.permute.xlu1 %62 }
  0x87   :  { %v53_v30 = vpop.permute.xlu0 %52 }
  0x8a   :  { %v73_v41 = vpop.permute.xlu1 %72 }
  0x8b   :  { %v68_v44 = vpop.permute.xlu0 %67 }
  0x8e   :  { %v83_v53 = vpop.permute.xlu1 %82 }
  0x8f   :  { %v78_v56 = vpop.permute.xlu0 %77 }
  0x92   :  { %v243_v4 = vpop.permute.xlu1 %242 }
  0x93   :  { %v238_v5 = vpop.permute.xlu0 %237 }
  0x96   :  { %v253_v11 = vpop.permute.xlu1 %252 }
  0x97   :  { %v248_v14 = vpop.permute.xlu0 %247 }
  0x9a   :  { %v369_v23 = vpop.permute.xlu1 %368 }
  0x9b   :  { %v364_v25 = vpop.permute.xlu0 %363 }
  0xdd   :  { %v512_v32 = vpop.f32.mrb[0].mxu0 }
  0xde   :  { %v186_v33 = vadd.f32 %v512_v32, %v53_v30  ;;  %v180_v34 = vpop.f32.mrb[1].mxu0 }
  0xdf   :  { %v181_v35 = vadd.f32 %v180_v34, %v48_v28 }
  0xe0   :  { %v220_v36 = vmax.f32 %v186_v33, 0.0 }
  0xe1   :  { %v219_v37 = vmax.f32 %v181_v35, 0.0  ;;  %v515_v38 = vpop.f32.mrb[2].mxu0 }
  0xe2   :  { %v196_v39 = vadd.f32 %v515_v38, %v63_v31  ;;  %v190_v40 = vpop.f32.mrb[3].mxu0 }
  0xe3   :  { %v191_v42 = vadd.f32 %v190_v40, %v58_v29  ;;  %v559_v43 = vpack.c.bf16 %v220_v36, %v219_v37 }
  0xe4   :  { %v222_v45 = vmax.f32 %v196_v39, 0.0 }
  0xe5   :  { %v221_v46 = vmax.f32 %v191_v42, 0.0  ;;  %v518_v47 = vpop.f32.mrb[4].mxu0  ;;  %560 = vmatprep.subr.bf16.mxu1 %v559_v43 }
  0xe6   :  { %v206_v48 = vadd.f32 %v518_v47, %v73_v41  ;;  %v200_v49 = vpop.f32.mrb[5].mxu0  ;;  %562 = vmatpush3.bf16.msra.mxu1 %v559_v43 }
  0xe7   :  { %v563_v50 = vpack.c.bf16 %v222_v45, %v221_v46  ;;  %v201_v51 = vadd.f32 %v200_v49, %v68_v44 }
  0xe8   :  { %v224_v52 = vmax.f32 %v206_v48, 0.0 }
  0xe9   :  { %v223_v54 = vmax.f32 %v201_v51, 0.0  ;;  %v521_v55 = vpop.f32.mrb[6].mxu0  ;;  %564 = vmatprep.subr.bf16.mxu1 %v563_v50 }
  0xea   :  { %v216_v57 = vadd.f32 %v521_v55, %v83_v53  ;;  %v210_v58 = vpop.f32.mrb[7].mxu0  ;;  %566 = vmatpush3.bf16.msra.mxu1 %v563_v50 }
  0xeb   :  { %v567_v59 = vpack.c.bf16 %v224_v52, %v223_v54  ;;  %v211_v60 = vadd.f32 %v210_v58, %v78_v56 }
  0xec   :  { %v226_v61 = vmax.f32 %v216_v57, 0.0 }
  0xed   :  { %v225_v62 = vmax.f32 %v211_v60, 0.0  ;;  %568 = vmatprep.subr.bf16.mxu1 %v567_v59 }
  0xee   :  { %570 = vmatpush3.bf16.msra.mxu1 %v567_v59 }
  0xef   :  { %v571_v63 = vpack.c.bf16 %v226_v61, %v225_v62 }
  0xf1   :  { %572 = vmatprep.subr.bf16.mxu1 %v571_v63 }
  0xf2   :  { %574 = vmatpush3.bf16.msra.mxu1 %v571_v63 }
  0xf5   :  { %539 = vmatmul.mubr.msk.f32.vlgmr.msra.gmra.mrb[0].mxu1 %vm255_vm2, %v228_v0 }
  0xf6   :  { %541 = vmatprep.mubr.msk.f32.mxu1 %vm255_vm2, %v229_v1 }
  0xf9   :  { %542 = vmatmul.mubr.msk.f32.gmra.mrb[2].mxu1 %vm255_vm2, %v230_v2 }
 0x1c8   :  { %v540_v6 = vpop.f32.mrb[0].mxu1 }
 0x1c9   :  { %v340_v7 = vadd.f32 %v540_v6, %v243_v4  ;;  %v334_v8 = vpop.f32.mrb[1].mxu1 }
 0x1ca   :  { %v335_v9 = vadd.f32 %v334_v8, %v238_v5 }
 0x1cb   :  { %v354_v10 = vmax.f32 %v340_v7, 0.0 }
 0x1cc   :  { %v353_v12 = vmax.f32 %v335_v9, 0.0  ;;  %v543_v13 = vpop.f32.mrb[2].mxu1 }
 0x1cd   :  { %v350_v15 = vadd.f32 %v543_v13, %v253_v11  ;;  %v344_v16 = vpop.f32.mrb[3].mxu1 }
 0x1ce   :  { %v575_v17 = vpack.c.bf16 %v354_v10, %v353_v12  ;;  %v345_v18 = vadd.f32 %v344_v16, %v248_v14 }
 0x1cf   :  { %v356_v19 = vmax.f32 %v350_v15, 0.0 }
 0x1d0   :  { %v355_v20 = vmax.f32 %v345_v18, 0.0  ;;  %576 = vmatprep.subr.bf16.mxu0 %v575_v17 }
 0x1d1   :  { %578 = vmatpush3.bf16.msra.mxu0 %v575_v17 }
 0x1d2   :  { %v579_v21 = vpack.c.bf16 %v356_v19, %v355_v20 }
 0x1d4   :  { %580 = vmatprep.subr.bf16.mxu0 %v579_v21 }
 0x1d5   :  { %582 = vmatpush3.bf16.msra.mxu0 %v579_v21 }
 0x1d8   :  { %553 = vmatmul.mubr.msk.f32.vlgmr.msra.gmra.mrb[8].mxu0 %vm371_vm3, %v358_v22 }
 0x2ab   :  { %v554_v24 = vpop.f32.mrb[8].mxu0 }
 0x2ac   :  { %v450_v26 = vadd.f32 %v554_v24, %v369_v23  ;;  %v444_v27 = vpop.f32.mrb[9].mxu0 }
 0x2ad   :  { %v445_v28 = vadd.f32 %v444_v27, %v364_v25 }
 0x2ae   :  { %455 = vst.msk [vmem:[%s747_s7 + $0x8] sm:$0xff] %vm453_vm4, %v450_v26 }
 0x2af   :  { %454 = vst.msk [vmem:[%s747_s7] sm:$0xff] %vm453_vm4, %v445_v28 }

</bundles_post_ra>
